<compile_context>
chip_gen: v6e
topology: v6e:2x2x1
jax: 0.10.0
libtpu: 0.0.40
codegen_flags: <defaults>
</compile_context>

<pallas_src>
import jax
import jax.numpy as jnp
from jax.experimental import pallas as pl
from jax.experimental.pallas import tpu as pltpu


def _round_up(x: int, m: int) -> int:
    return ((x + m - 1) // m) * m


def _choose_batch_tile(B: int) -> int:
    """Pick the batch tile (rows per grid step)."""
    if B <= 256:
        # One tile; latency-bound regime where 2-TC sharding doesn't help.
        return _round_up(B, 8)
    # Candidates capped at 512; require >= 2 grid steps so the "parallel"
    # batch axis can actually shard across both TensorCores on v7x.
    # Minimize padded-batch waste, tie-break toward the larger tile
    # (fewer per-step overheads).
    candidates = [t for t in (128, 256, 512) if (B + t - 1) // t >= 2]
    return min(candidates, key=lambda t: (_round_up(B, t) - B, -t))


def decoder_kernel(x_ref, w1_ref, b1_ref, w2_ref, b2_ref, out_ref):
    # In-kernel f32 -> bf16 cast (cheap VPU work; avoids a padded HBM copy).
    x = x_ref[...].astype(jnp.bfloat16)
    # First linear on the MXU (bf16 x bf16 -> f32 accumulation).
    h = jnp.dot(x, w1_ref[...], preferred_element_type=jnp.float32)
    # Bias + ReLU in f32 (correct choice for v5e: no bf16 VPU/EUP).
    h = jnp.maximum(h + b1_ref[...], 0.0)
    # Second linear: bf16 activations, f32 accumulation, unpadded output width.
    y = jnp.dot(h.astype(jnp.bfloat16), w2_ref[...],
                preferred_element_type=jnp.float32)
    out_ref[...] = jax.nn.sigmoid(y + b2_ref[...]).astype(out_ref.dtype)


def prepare_decoder_params(w1_t, b1, w2_t, b2):
    """One-time (model-load) weight prep: bf16 cast + hidden-dim padding.

    w1_t: [in_dim, hidden]   (transposed PyTorch nn.Linear weight)
    b1:   [hidden] or [1, hidden]
    w2_t: [hidden, out_dim]
    b2:   [out_dim] or [1, out_dim]
    """
    in_dim, hidden_dim = w1_t.shape
    out_dim = w2_t.shape[1]
    hid_p = _round_up(hidden_dim, 128)

    b1 = jnp.asarray(b1, jnp.float32).reshape(1, hidden_dim)
    b2 = jnp.asarray(b2, jnp.float32).reshape(1, out_dim)

    # Zero-padded hidden columns give relu(0 + 0) = 0 and the matching zero
    # rows of w2 contribute nothing -> padding is semantically inert.
    w1p = jnp.zeros((in_dim, hid_p), jnp.bfloat16).at[:, :hidden_dim].set(
        w1_t.astype(jnp.bfloat16))
    b1p = jnp.zeros((1, hid_p), jnp.float32).at[:, :hidden_dim].set(b1)
    w2p = jnp.zeros((hid_p, out_dim), jnp.bfloat16).at[:hidden_dim, :].set(
        w2_t.astype(jnp.bfloat16))
    b2p = b2
    return w1p, b1p, w2p, b2p


def decoder_forward(x, w1p, b1p, w2p, b2p):
    """x: [B, latent+output] f32; params from prepare_decoder_params().

    Returns f32 [B, output_dim].
    """
    B, in_dim = x.shape
    hid_p = w1p.shape[1]
    out_dim = w2p.shape[1]

    tm = _choose_batch_tile(B)
    b_p = _round_up(B, tm)

    # Only the batch axis is ever padded, and only when needed.
    x_in = x if b_p == B else jnp.pad(x, ((0, b_p - B), (0, 0)))

    grid = (b_p // tm,)

    cost = pl.CostEstimate(
        flops=2 * b_p * (in_dim * hid_p + hid_p * out_dim),
        transcendentals=b_p * out_dim,           # sigmoid exp
        bytes_accessed=(b_p * in_dim * 4         # x: f32, unpadded features
                        + w1p.size * 2 + w2p.size * 2
                        + b1p.size * 4 + b2p.size * 4
                        + b_p * out_dim * 4),    # out: f32, unpadded features
    )

    out = pl.pallas_call(
        decoder_kernel,
        out_shape=jax.ShapeDtypeStruct((b_p, out_dim), jnp.float32),
        grid=grid,
        in_specs=[
            pl.BlockSpec((tm, in_dim), lambda i: (i, 0)),     # x: batch-tiled
            pl.BlockSpec((in_dim, hid_p), lambda i: (0, 0)),  # w1: VMEM-resident
            pl.BlockSpec((1, hid_p), lambda i: (0, 0)),       # b1: resident
            pl.BlockSpec((hid_p, out_dim), lambda i: (0, 0)), # w2: resident
            pl.BlockSpec((1, out_dim), lambda i: (0, 0)),     # b2: resident
        ],
        out_specs=pl.BlockSpec((tm, out_dim), lambda i: (i, 0)),
        compiler_params=pltpu.CompilerParams(
            dimension_semantics=("parallel",)),
        cost_estimate=cost,
    )(x_in, w1p, b1p, w2p, b2p)

    return out if b_p == B else out[:B]


def reference_forward(x, w1_t, b1, w2_t, b2):
    h = jnp.maximum(x @ w1_t + b1, 0.0)
    return jax.nn.sigmoid(h @ w2_t + b2)


if __name__ == "__main__":
    # Small shapes consistent with the module.
    latent_dim, hidden_dim, output_dim = 16, 32, 16
    batch = 8
    in_dim = latent_dim + output_dim  # Decoder consumes concatenated [z, y]

    key = jax.random.PRNGKey(0)
    k_x, k_w1, k_b1, k_w2, k_b2 = jax.random.split(key, 5)

    x = jax.random.normal(k_x, (batch, in_dim), dtype=jnp.float32)
    lim1 = 1.0 / jnp.sqrt(in_dim)
    lim2 = 1.0 / jnp.sqrt(hidden_dim)
    # Stored transposed relative to PyTorch's [out, in] convention.
    w1_t = jax.random.uniform(k_w1, (in_dim, hidden_dim),
                              minval=-lim1, maxval=lim1, dtype=jnp.float32)
    b1 = jax.random.uniform(k_b1, (hidden_dim,),
                            minval=-lim1, maxval=lim1, dtype=jnp.float32)
    w2_t = jax.random.uniform(k_w2, (hidden_dim, output_dim),
                              minval=-lim2, maxval=lim2, dtype=jnp.float32)
    b2 = jax.random.uniform(k_b2, (output_dim,),
                            minval=-lim2, maxval=lim2, dtype=jnp.float32)

    # Load-time prep (hoisted out of the per-call path).
    params = prepare_decoder_params(w1_t, b1, w2_t, b2)

    out = decoder_forward(x, *params)
    out = jax.block_until_ready(out)

    ref = reference_forward(x, w1_t, b1, w2_t, b2)
    assert out.shape == (batch, output_dim)
    # Looser tolerance: kernel uses bf16 matmul inputs with f32 accumulation.
    assert jnp.allclose(out, ref, atol=2e-2, rtol=2e-2), "mismatch vs reference"

    print("KERNEL_OK")
</pallas_src>

<mosaic_0001>
module attributes {stable_mosaic.version = 11 : i64} {
  func.func @decoder_kernel(%arg0: i32, %arg1: memref<8x32xf32, #tpu.memory_space<vmem>>, %arg2: memref<32x128xbf16, #tpu.memory_space<vmem>>, %arg3: memref<1x128xf32, #tpu.memory_space<vmem>>, %arg4: memref<128x16xbf16, #tpu.memory_space<vmem>>, %arg5: memref<1x16xf32, #tpu.memory_space<vmem>>, %arg6: memref<8x16xf32, #tpu.memory_space<vmem>>) attributes {dimension_semantics = [#tpu.dimension_semantics<parallel>], iteration_bounds = array<i64: 1>, scalar_prefetch = 0 : i64, scratch_operands = 0 : i64, tpu.core_type = #tpu.core_type<tc>, window_params = [{transform_indices = @transform_0, window_bounds = array<i64: 8, 32>}, {pipeline_mode = #tpu.pipeline_mode<synchronous>, transform_indices = @transform_1, window_bounds = array<i64: 32, 128>}, {pipeline_mode = #tpu.pipeline_mode<synchronous>, transform_indices = @transform_2, window_bounds = array<i64: 1, 128>}, {pipeline_mode = #tpu.pipeline_mode<synchronous>, transform_indices = @transform_3, window_bounds = array<i64: 128, 16>}, {pipeline_mode = #tpu.pipeline_mode<synchronous>, transform_indices = @transform_4, window_bounds = array<i64: 1, 16>}, {transform_indices = @transform_5, window_bounds = array<i64: 8, 16>}]} {
    %c0 = arith.constant 0 : index
    %c0_0 = arith.constant 0 : index
    %0 = vector.load %arg1[%c0, %c0_0] : memref<8x32xf32, #tpu.memory_space<vmem>>, vector<8x32xf32>
    %1 = arith.truncf %0 : vector<8x32xf32> to vector<8x32xbf16>
    %c0_1 = arith.constant 0 : index
    %c0_2 = arith.constant 0 : index
    %2 = vector.load %arg2[%c0_1, %c0_2] : memref<32x128xbf16, #tpu.memory_space<vmem>>, vector<32x128xbf16>
    %cst = arith.constant dense<0.000000e+00> : vector<8x128xf32>
    %3 = tpu.matmul %1, %2, %cst {dimension_numbers = #tpu.dot_dimension_numbers<[1], [0], [0], [1], [0, 0, 1, 1], [], []>} : vector<8x32xbf16>, vector<32x128xbf16>, vector<8x128xf32> -> vector<8x128xf32>
    %c0_3 = arith.constant 0 : index
    %c0_4 = arith.constant 0 : index
    %4 = vector.load %arg3[%c0_3, %c0_4] : memref<1x128xf32, #tpu.memory_space<vmem>>, vector<1x128xf32>
    %5 = vector.broadcast %4 : vector<1x128xf32> to vector<8x128xf32>
    %6 = arith.addf %3, %5 : vector<8x128xf32>
    %cst_5 = arith.constant 0.000000e+00 : f32
    %7 = vector.broadcast %cst_5 : f32 to vector<8x128xf32>
    %8 = arith.maximumf %6, %7 : vector<8x128xf32>
    %9 = arith.truncf %8 : vector<8x128xf32> to vector<8x128xbf16>
    %c0_6 = arith.constant 0 : index
    %c0_7 = arith.constant 0 : index
    %10 = vector.load %arg4[%c0_6, %c0_7] : memref<128x16xbf16, #tpu.memory_space<vmem>>, vector<128x16xbf16>
    %cst_8 = arith.constant dense<0.000000e+00> : vector<8x16xf32>
    %11 = tpu.matmul %9, %10, %cst_8 {dimension_numbers = #tpu.dot_dimension_numbers<[1], [0], [0], [1], [0, 0, 1, 1], [], []>} : vector<8x128xbf16>, vector<128x16xbf16>, vector<8x16xf32> -> vector<8x16xf32>
    %c0_9 = arith.constant 0 : index
    %c0_10 = arith.constant 0 : index
    %12 = vector.load %arg5[%c0_9, %c0_10] : memref<1x16xf32, #tpu.memory_space<vmem>>, vector<1x16xf32>
    %13 = vector.broadcast %12 : vector<1x16xf32> to vector<8x16xf32>
    %14 = arith.addf %11, %13 : vector<8x16xf32>
    %15 = arith.negf %14 : vector<8x16xf32>
    %16 = math.exp %15 : vector<8x16xf32>
    %cst_11 = arith.constant 1.000000e+00 : f32
    %17 = vector.broadcast %cst_11 : f32 to vector<8x16xf32>
    %18 = arith.addf %17, %16 : vector<8x16xf32>
    %19 = arith.divf %17, %18 : vector<8x16xf32>
    %c0_12 = arith.constant 0 : index
    %c0_13 = arith.constant 0 : index
    %20 = vector.load %arg6[%c0_12, %c0_13] : memref<8x16xf32, #tpu.memory_space<vmem>>, vector<8x16xf32>
    tpu.vector_store %arg6[%c0_12, %c0_13], %19 {strides = array<i32>} : memref<8x16xf32, #tpu.memory_space<vmem>>, vector<8x16xf32>,
    return
  }
  func.func @transform_0(%arg0: i32) -> (i32, i32) {
    %c0_i32 = arith.constant 0 : i32
    %c0_i32_0 = arith.constant 0 : i32
    return %arg0, %c0_i32 : i32, i32
  }
  func.func @transform_1(%arg0: i32) -> (i32, i32) {
    %c0_i32 = arith.constant 0 : i32
    %c0_i32_0 = arith.constant 0 : i32
    %c0_i32_1 = arith.constant 0 : i32
    return %c0_i32, %c0_i32_0 : i32, i32
  }
  func.func @transform_2(%arg0: i32) -> (i32, i32) {
    %c0_i32 = arith.constant 0 : i32
    %c0_i32_0 = arith.constant 0 : i32
    %c0_i32_1 = arith.constant 0 : i32
    return %c0_i32, %c0_i32_0 : i32, i32
  }
  func.func @transform_3(%arg0: i32) -> (i32, i32) {
    %c0_i32 = arith.constant 0 : i32
    %c0_i32_0 = arith.constant 0 : i32
    %c0_i32_1 = arith.constant 0 : i32
    return %c0_i32, %c0_i32_0 : i32, i32
  }
  func.func @transform_4(%arg0: i32) -> (i32, i32) {
    %c0_i32 = arith.constant 0 : i32
    %c0_i32_0 = arith.constant 0 : i32
    %c0_i32_1 = arith.constant 0 : i32
    return %c0_i32, %c0_i32_0 : i32, i32
  }
  func.func @transform_5(%arg0: i32) -> (i32, i32) {
    %c0_i32 = arith.constant 0 : i32
    %c0_i32_0 = arith.constant 0 : i32
    return %arg0, %c0_i32 : i32, i32
  }
}

</mosaic_0001>

<bundles_post_ra>
// kernel: tpu_custom_call.1
= control target key start
LH: loop header
LB: loop body
LE: loop exit
PB: predicated region body
PF: predicated region fallthrough
CT: control target
= control target key end

     0   :  { %v319_v1 = vmov 0.0   ;;  %vm320_vm0 = vmmov 0   ;;  %vm47_vm1 = vcmask 261120   ;;  %s394_s0 = inlined_call_operand.vmem [shape: f32[8,32], index: 0, kind: input, shape index: {}]   ;;  %s395_s1 = inlined_call_operand.vmem [shape: bf16[32,128], index: 1, kind: input, shape index: {}]   ;;  %s396_s2 = inlined_call_operand.vmem [shape: f32[1,128], index: 2, kind: input, shape index: {}]   ;;  %s397_s3 = inlined_call_operand.vmem [shape: bf16[128,16], index: 3, kind: input, shape index: {}]   ;;  %s398_s4 = inlined_call_operand.vmem [shape: f32[1,16], index: 4, kind: input, shape index: {}]   ;;  %s399_s5 = inlined_call_operand.hbm [shape: f32[8,16], index: 5, kind: output, shape index: {}]  }
   0x1   :  { %v283_v0 = vld [vmem:[%s395_s1 + $0x8] sm:$0xff]   ;;  %252 = vmatprep.subr.bf16.mxu0 %v319_v1  ;;  %v284_v2 = vld [vmem:[%s395_s1] sm:$0xff]   ;;  %260 = vmatprep.subr.bf16.mxu1 %v319_v1  ;;  %v285_v4 = vld [vmem:[%s397_s3 + $0x38] sm:$0xff]  }
   0x2   :  { %253 = vmatpush3.bf16.msra.mxu0 %v283_v0  ;;  %256 = vmatprep.mubr.msk.bf16.mxu0 %vm320_vm0, %v319_v1  ;;  %v22_v3 = vld [vmem:[%s394_s0] sm:$0xff]  ;;  %v286_v6 = vld [vmem:[%s397_s3 + $0x30] sm:$0xff]   ;;  %v287_v7 = vld [vmem:[%s397_s3 + $0x28] sm:$0xff]  }
   0x3   :  { %254 = vmatprep.subr.bf16.mxu0 %v319_v1  ;;  %276 = vmatprep.mubr.msk.bf16.mxu1 %vm320_vm0, %v319_v1  ;;  %v23_v5 = vpack.c.bf16 %v22_v3, %v22_v3 }
   0x4   :  { %261 = vmatpush3.bf16.msra.mxu1 %v285_v4 }
   0x5   :  { %262 = vmatprep.subr.bf16.mxu1 %v319_v1 }
   0x6   :  { %255 = vmatpush3.bf16.msra.mxu0 %v284_v2 }
   0x8   :  { %263 = vmatpush3.bf16.msra.mxu1 %v286_v6 }
   0x9   :  { %257 = vmatmul.mubr.msk.bf16.vlgmr.msra.gmra.mxu0 %vm47_vm1, %v23_v5  ;;  %264 = vmatprep.subr.bf16.mxu1 %v319_v1 }
   0xa   :  { %10 = vsyncpa [#allocation3], 0  ;;  %v288_v8 = vld [vmem:[%s397_s3 + $0x20] sm:$0xff]   ;;  %v289_v9 = vld [vmem:[%s397_s3 + $0x18] sm:$0xff]   ;;  %vm210_vm2 = vcmask 130048  }
   0xb   :  { %v290_v10 = vld [vmem:[%s397_s3 + $0x10] sm:$0xff]   ;;  %v291_v11 = vld [vmem:[%s397_s3 + $0x8] sm:$0xff]   ;;  %v292_v12 = vld [vmem:[%s397_s3] sm:$0xff]  }
   0xc   :  { %265 = vmatpush3.bf16.msra.mxu1 %v287_v7  ;;  %v226_v13 = vld [vmem:[%s396_s2] ss:$0 sm:$0xff]  ;;  %s321_s2 = smov [#allocation2]  }
   0xd   :  { %266 = vmatprep.subr.bf16.mxu1 %v319_v1  ;;  %v230_v21 = vld [vmem:[%s398_s4] ss:$0 sm:$0xff]  ;;  %s218_s3 = sshll.u32 %s321_s2, 4  ;;  %s219_s3 = int_to_ptr.vmem [resolvable:$true] %s218_s3 }
   0xe   :  { %s297_s17 = scalar_lea.vmem %s219_s3, 128  ;;  %p302_p1 = scmp.lt.s32.totalorder %s219_s3, %s219_s3 }
   0xf   :  { %p298_p0 = scmp.ne.s32.totalorder %s219_s3, %s297_s17  ;;  %p303_p2 = scmp.lt.s32.totalorder %s297_s17, %s297_s17 }
  0x10   :  { %267 = vmatpush3.bf16.msra.mxu1 %v288_v8 }
  0x11   :  { %268 = vmatprep.subr.bf16.mxu1 %v319_v1  ;;  %p304_p3 = por %p303_p2, %p302_p1 }
  0x13   :  { %p305_p4 = pnand %p304_p3, %p298_p0 }
  0x14   :  { %269 = vmatpush3.bf16.msra.mxu1 %v289_v9 }
  0x15   :  { %270 = vmatprep.subr.bf16.mxu1 %v319_v1 }
  0x18   :  { %271 = vmatpush3.bf16.msra.mxu1 %v290_v10 }
  0x19   :  { %272 = vmatprep.subr.bf16.mxu1 %v319_v1 }
  0x1c   :  { %273 = vmatpush3.bf16.msra.mxu1 %v291_v11 }
  0x1d   :  { %274 = vmatprep.subr.bf16.mxu1 %v319_v1 }
  0x20   :  { %275 = vmatpush3.bf16.msra.mxu1 %v292_v12 }
  0xc9   :  { %v85_v14 = vpop.f32.mrf.mxu0 }
  0xca   :  { %v86_v15 = vadd.f32 %v226_v13, %v85_v14 }
  0xcb   :  { %v258_v16 = vpop.f32.mrf.mxu0 }
  0xcc   :  { %v91_v17 = vmax.f32 %v86_v15, 0.0 }
  0xcd   :  { %v88_v18 = vpop.f32.mrf.mxu0 }
  0xce   :  { %v92_v19 = vpack.c.bf16 %v91_v17, %v91_v17 }
  0xcf   :  { %v259_v20 = vpop.f32.mrf.mxu0 }
  0xd0   :  { %277 = vmatmul.mubr.bf16.vlgmr.msra.gmra.mxu1 %v92_v19 }
 0x190   :  { %v198_v22 = vpop.f32.mrf.mxu1 }
 0x191   :  { %v199_v23 = vadd.f32 %v230_v21, %v198_v22 }
 0x192   :  { %v278_v24 = vpop.f32.mrf.mxu1 }
 0x193   :  { %v239_v25 = vmul.f32 -1.442695, %v199_v23 }
 0x194   :  { %v201_v26 = vpop.f32.mrf.mxu1 }
 0x195   :  { %293 = vpow2.f32 %v239_v25 }
 0x196   :  { %v279_v27 = vpop.f32.mrf.mxu1 }
 0x1a2   :  { %v294_v28 = vpop.eup %293 }
 0x1a3   :  { %v207_v29 = vadd.f32 1.0, %v294_v28 }
 0x1a5   :  { %295 = vrcp.f32 %v207_v29 }
 0x1b2   :  { %v296_v30 = vpop.eup %295 }
 0x1b3   :  { %211 = vst.msk [vmem:[#allocation2] sm:$0xff] %vm210_vm2, %v296_v30 }
 0x1b4   :  { %308 = shalt.err (!%p305_p4)
}
 0x1b5   :  { %221 = dma.vmem_to_hbm [thread:$0]  %s219_s3, 128, %s399_s5, [#allocation3]  }
 0x1b6   :  { %317 = dma.done.wait [#allocation3], 128  }
 0x1b7   :  { %318 = vsyncadd [#allocation3], 4294967168 }
 0x1b8   :  { %225 = vsyncpa [#allocation3], 1 }

</bundles_post_ra>
